<compile_context>
chip_gen: v7x
topology: tpu7x:2x2x1
jax: 0.10.0
libtpu: 0.0.40
codegen_flags: <defaults>
</compile_context>

<pallas_src>
import jax
import jax.numpy as jnp
import numpy as np
from jax import lax
from jax.experimental import pallas as pl
from jax.experimental.pallas import tpu as pltpu


def _net2d_kernel(patches_ref, w1t_ref, w2t_ref, bias_ref, out_ref):
    # patches_ref: (K1, N*L)       im2col patches; batch*spatial on lanes
    # w1t_ref    : (Cout, K1)      conv3x3 weights with BN scale folded in (matmul dtype)
    # w2t_ref    : (J_pad, Cout)   1x1 conv weights, transposed, zero-padded rows (matmul dtype)
    # bias_ref   : (Cout+J_pad, 1) packed f32 column: [BN shift ; 1x1 bias]
    # out_ref    : (J_pad, N*L)    lane-dense output slab (f32)
    cout = w1t_ref.shape[0]

    # conv3x3 (BN-scaled) as one MXU matmul: (Cout, K1) @ (K1, N*L) -> (Cout, N*L)
    acc = jnp.dot(w1t_ref[...], patches_ref[...],
                  preferred_element_type=jnp.float32)
    # BN shift + ReLU (f32 epilogue; channels on sublanes, batch*spatial on lanes)
    y = jnp.maximum(acc + bias_ref[:cout, :], 0.0)
    # 1x1 conv: (J_pad, Cout) @ (Cout, N*L) -> (J_pad, N*L), + bias, sigmoid (EUP)
    z = jnp.dot(w2t_ref[...], y.astype(w2t_ref.dtype),
                preferred_element_type=jnp.float32) + bias_ref[cout:, :]
    out_ref[...] = jax.nn.sigmoid(z).astype(out_ref.dtype)


def net_2d_forward(x_nchw, params, stride=1, matmul_dtype=jnp.bfloat16):
    """x_nchw: (N, Cin, H, W) float32. Returns (N, joints, Ho, Wo) float32."""
    eps = 1e-5
    w1, gamma, beta, mean, var, w2, b2 = (
        params["w1"], params["bn_gamma"], params["bn_beta"],
        params["bn_mean"], params["bn_var"], params["w2"], params["b2"])

    N, Cin, H, W = x_nchw.shape
    Cout = w1.shape[-1]
    J = w2.shape[-1]
    J_pad = ((J + 7) // 8) * 8          # sublane multiple for the f32 result rows
    Ho = (H + 2 - 3) // stride + 1
    Wo = (W + 2 - 3) // stride + 1
    L = Ho * Wo
    NL = N * L                           # 512 (stride=1) / 128 (stride=2): lane-dense
    K1 = 9 * Cin

    # Zero-pad spatially (conv3x3 padding=1) and build the im2col patch matrix in
    # the wrapper (tens of KB).  Strided slicing stays out of Mosaic; the kernel
    # sees one lane-dense (K1, N*L) operand.
    x_pad = jnp.pad(x_nchw, ((0, 0), (0, 0), (1, 1), (1, 1)))
    taps = []
    for dy in range(3):
        for dx in range(3):
            taps.append(x_pad[:, :,
                              dy:dy + stride * (Ho - 1) + 1:stride,
                              dx:dx + stride * (Wo - 1) + 1:stride])
    # (9, N, Cin, Ho, Wo) -> (9, Cin, N, Ho, Wo) -> (K1, N*L); K1 is tap-major, Cin-minor.
    patches = (jnp.stack(taps, axis=0)
               .transpose(0, 2, 1, 3, 4)
               .reshape(K1, NL)
               .astype(matmul_dtype))

    # Fold eval-mode BatchNorm scale into the conv3x3 weights (in f32, then cast).
    inv_std = 1.0 / jnp.sqrt(var + eps)
    scale = (gamma * inv_std).astype(jnp.float32)                  # (Cout,)
    shift = (beta - mean * gamma * inv_std).astype(jnp.float32)    # (Cout,)
    w1t_f32 = jnp.transpose(w1, (2, 0, 1)).reshape(Cout, K1).astype(jnp.float32)
    w1t = (w1t_f32 * scale[:, None]).astype(matmul_dtype)          # (Cout, K1)

    # 1x1 conv weights/bias, joints padded to J_pad (zero rows; sliced off after).
    w2t = jnp.zeros((J_pad, Cout), jnp.float32).at[:J].set(
        jnp.transpose(w2, (1, 0)).astype(jnp.float32)).astype(matmul_dtype)
    b2_pad = jnp.zeros((J_pad,), jnp.float32).at[:J].set(b2.astype(jnp.float32))

    # Single packed per-channel bias column: [BN shift ; 1x1 bias]  -> one DMA.
    bias_packed = jnp.concatenate([shift, b2_pad]).reshape(Cout + J_pad, 1)

    itemsize = jnp.dtype(matmul_dtype).itemsize
    cost = pl.CostEstimate(
        flops=2 * NL * (Cout * K1 + J_pad * Cout),
        transcendentals=J_pad * NL,
        bytes_accessed=(patches.size * itemsize + w1t.size * itemsize
                        + w2t.size * itemsize + bias_packed.size * 4
                        + J_pad * NL * 4),
    )

    # Single grid step covering the whole batch; all blocks = full arrays.
    # TODO(synk): if N or L grow substantially, revisit (a) grid=(N,) with
    # dimension_semantics=("parallel",) for v7x's 2 TensorCores and (b) tiling the
    # N*L lane axis against v7x's 32 MiB scoped VMEM -- not worth it at this size.
    out_slab = pl.pallas_call(
        _net2d_kernel,
        out_shape=jax.ShapeDtypeStruct((J_pad, NL), jnp.float32),
        grid_spec=pltpu.PrefetchScalarGridSpec(
            num_scalar_prefetch=0,
            grid=(1,),
            in_specs=[
                pl.BlockSpec((K1, NL), lambda i: (0, 0)),
                pl.BlockSpec((Cout, K1), lambda i: (0, 0)),
                pl.BlockSpec((J_pad, Cout), lambda i: (0, 0)),
                pl.BlockSpec((Cout + J_pad, 1), lambda i: (0, 0)),
            ],
            out_specs=pl.BlockSpec((J_pad, NL), lambda i: (0, 0)),
        ),
        compiler_params=pltpu.CompilerParams(
            dimension_semantics=("arbitrary",)),
        cost_estimate=cost,
    )(patches, w1t, w2t, bias_packed)

    # (J_pad, N*L) -> (J, N, Ho, Wo) -> (N, J, Ho, Wo): tiny layout plumbing in XLA.
    return jnp.transpose(out_slab[:J].reshape(J, N, Ho, Wo), (1, 0, 2, 3))


def _reference_forward(x_nchw, params, stride=1):
    """Pure-JAX reference (mirrors the PyTorch forward in eval mode, f32)."""
    eps = 1e-5
    x = jnp.transpose(x_nchw, (0, 2, 3, 1))  # NHWC
    y = lax.conv_general_dilated(
        x, params["w1"].reshape(3, 3, x.shape[-1], -1),
        window_strides=(stride, stride), padding=((1, 1), (1, 1)),
        dimension_numbers=("NHWC", "HWIO", "NHWC"))
    y = (y - params["bn_mean"]) / jnp.sqrt(params["bn_var"] + eps)
    y = y * params["bn_gamma"] + params["bn_beta"]
    y = jnp.maximum(y, 0.0)
    z = jnp.einsum("nhwc,cj->nhwj", y, params["w2"]) + params["b2"]
    z = jax.nn.sigmoid(z)
    return jnp.transpose(z, (0, 3, 1, 2))


def make_params(key, in_features, out_features, joints):
    ks = jax.random.split(key, 6)
    # conv3x3 weights stored tap-major: (9, Cin, Cout), tap index t = dy*3 + dx
    w1 = jax.random.normal(ks[0], (9, in_features, out_features), jnp.float32) * 0.1
    bn_gamma = 1.0 + 0.1 * jax.random.normal(ks[1], (out_features,), jnp.float32)
    bn_beta = 0.1 * jax.random.normal(ks[2], (out_features,), jnp.float32)
    bn_mean = 0.05 * jax.random.normal(ks[3], (out_features,), jnp.float32)
    bn_var = jnp.abs(1.0 + 0.1 * jax.random.normal(ks[4], (out_features,), jnp.float32))
    w2 = jax.random.normal(ks[5], (out_features, joints), jnp.float32) * 0.1
    b2 = jnp.linspace(-0.2, 0.2, joints, dtype=jnp.float32)
    return {"w1": w1, "bn_gamma": bn_gamma, "bn_beta": bn_beta,
            "bn_mean": bn_mean, "bn_var": bn_var, "w2": w2, "b2": b2}


if __name__ == "__main__":
    # Small shapes consistent with the module: N=2, Cin=4, H=W=16, Cout=32, joints=21
    N, Cin, H, W = 2, 4, 16, 16
    Cout, joints = 32, 21

    key = jax.random.PRNGKey(0)
    kx, kp = jax.random.split(key)
    x = jax.random.normal(kx, (N, Cin, H, W), jnp.float32)
    params = make_params(kp, Cin, Cout, joints)

    # 1) Performance default: bf16 MXU operands, f32 accumulation/epilogue.
    out_bf16 = jax.block_until_ready(
        net_2d_forward(x, params, stride=1, matmul_dtype=jnp.bfloat16))
    ref1 = _reference_forward(x, params, stride=1)
    assert out_bf16.shape == (N, joints, H, W)
    np.testing.assert_allclose(np.asarray(out_bf16), np.asarray(ref1),
                               atol=1e-2, rtol=1e-2)  # bf16 matmul tolerance

    # 2) Numerics validation: pure f32 path at tight tolerance.
    out_f32 = jax.block_until_ready(
        net_2d_forward(x, params, stride=1, matmul_dtype=jnp.float32))
    np.testing.assert_allclose(np.asarray(out_f32), np.asarray(ref1),
                               atol=2e-3, rtol=2e-3)

    # 3) stride=2 path: N*L = 128 lanes -> still lane-dense compute and stores.
    out_s2 = jax.block_until_ready(
        net_2d_forward(x, params, stride=2, matmul_dtype=jnp.float32))
    ref2 = _reference_forward(x, params, stride=2)
    assert out_s2.shape == (N, joints, H // 2, W // 2)
    np.testing.assert_allclose(np.asarray(out_s2), np.asarray(ref2),
                               atol=2e-3, rtol=2e-3)

    print("KERNEL_OK")
</pallas_src>

<mosaic_0001>
module attributes {stable_mosaic.version = 11 : i64} {
  func.func @_net2d_kernel(%arg0: i32, %arg1: memref<36x512xbf16, #tpu.memory_space<vmem>>, %arg2: memref<32x36xbf16, #tpu.memory_space<vmem>>, %arg3: memref<24x32xbf16, #tpu.memory_space<vmem>>, %arg4: memref<56x1xf32, #tpu.memory_space<vmem>>, %arg5: memref<24x512xf32, #tpu.memory_space<vmem>>) attributes {dimension_semantics = [#tpu.dimension_semantics<arbitrary>], iteration_bounds = array<i64: 1>, scalar_prefetch = 0 : i64, scratch_operands = 0 : i64, tpu.core_type = #tpu.core_type<tc>, window_params = [{pipeline_mode = #tpu.pipeline_mode<synchronous>, transform_indices = @transform_0, window_bounds = array<i64: 36, 512>}, {pipeline_mode = #tpu.pipeline_mode<synchronous>, transform_indices = @transform_1, window_bounds = array<i64: 32, 36>}, {pipeline_mode = #tpu.pipeline_mode<synchronous>, transform_indices = @transform_2, window_bounds = array<i64: 24, 32>}, {pipeline_mode = #tpu.pipeline_mode<synchronous>, transform_indices = @transform_3, window_bounds = array<i64: 56, 1>}, {pipeline_mode = #tpu.pipeline_mode<synchronous>, transform_indices = @transform_4, window_bounds = array<i64: 24, 512>}]} {
    %c0 = arith.constant 0 : index
    %c0_0 = arith.constant 0 : index
    %0 = vector.load %arg2[%c0, %c0_0] : memref<32x36xbf16, #tpu.memory_space<vmem>>, vector<32x36xbf16>
    %c0_1 = arith.constant 0 : index
    %c0_2 = arith.constant 0 : index
    %1 = vector.load %arg1[%c0_1, %c0_2] : memref<36x512xbf16, #tpu.memory_space<vmem>>, vector<36x512xbf16>
    %cst = arith.constant dense<0.000000e+00> : vector<32x512xf32>
    %2 = tpu.matmul %0, %1, %cst {dimension_numbers = #tpu.dot_dimension_numbers<[1], [0], [0], [1], [0, 0, 1, 1], [], []>} : vector<32x36xbf16>, vector<36x512xbf16>, vector<32x512xf32> -> vector<32x512xf32>
    %c0_3 = arith.constant 0 : index
    %c0_4 = arith.constant 0 : index
    %3 = vector.load %arg4[%c0_3, %c0_4] : memref<56x1xf32, #tpu.memory_space<vmem>>, vector<32x1xf32>
    %4 = vector.broadcast %3 : vector<32x1xf32> to vector<32x512xf32>
    %5 = arith.addf %2, %4 : vector<32x512xf32>
    %cst_5 = arith.constant 0.000000e+00 : f32
    %6 = vector.broadcast %cst_5 : f32 to vector<32x512xf32>
    %7 = arith.maximumf %5, %6 : vector<32x512xf32>
    %c0_6 = arith.constant 0 : index
    %c0_7 = arith.constant 0 : index
    %8 = vector.load %arg3[%c0_6, %c0_7] : memref<24x32xbf16, #tpu.memory_space<vmem>>, vector<24x32xbf16>
    %9 = arith.truncf %7 : vector<32x512xf32> to vector<32x512xbf16>
    %cst_8 = arith.constant dense<0.000000e+00> : vector<24x512xf32>
    %10 = tpu.matmul %8, %9, %cst_8 {dimension_numbers = #tpu.dot_dimension_numbers<[1], [0], [0], [1], [0, 0, 1, 1], [], []>} : vector<24x32xbf16>, vector<32x512xbf16>, vector<24x512xf32> -> vector<24x512xf32>
    %c32 = arith.constant 32 : index
    %c0_9 = arith.constant 0 : index
    %11 = vector.load %arg4[%c32, %c0_9] : memref<56x1xf32, #tpu.memory_space<vmem>>, vector<24x1xf32>
    %12 = vector.broadcast %11 : vector<24x1xf32> to vector<24x512xf32>
    %13 = arith.addf %10, %12 : vector<24x512xf32>
    %14 = arith.negf %13 : vector<24x512xf32>
    %15 = math.exp %14 : vector<24x512xf32>
    %cst_10 = arith.constant 1.000000e+00 : f32
    %16 = vector.broadcast %cst_10 : f32 to vector<24x512xf32>
    %17 = arith.addf %16, %15 : vector<24x512xf32>
    %18 = arith.divf %16, %17 : vector<24x512xf32>
    %c0_11 = arith.constant 0 : index
    %c0_12 = arith.constant 0 : index
    %19 = vector.load %arg5[%c0_11, %c0_12] : memref<24x512xf32, #tpu.memory_space<vmem>>, vector<24x512xf32>
    tpu.vector_store %arg5[%c0_11, %c0_12], %18 {strides = array<i32>} : memref<24x512xf32, #tpu.memory_space<vmem>>, vector<24x512xf32>,
    return
  }
  func.func @transform_0(%arg0: i32) -> (i32, i32) {
    %c0_i32 = arith.constant 0 : i32
    %c0_i32_0 = arith.constant 0 : i32
    %c0_i32_1 = arith.constant 0 : i32
    return %c0_i32, %c0_i32_0 : i32, i32
  }
  func.func @transform_1(%arg0: i32) -> (i32, i32) {
    %c0_i32 = arith.constant 0 : i32
    %c0_i32_0 = arith.constant 0 : i32
    %c0_i32_1 = arith.constant 0 : i32
    return %c0_i32, %c0_i32_0 : i32, i32
  }
  func.func @transform_2(%arg0: i32) -> (i32, i32) {
    %c0_i32 = arith.constant 0 : i32
    %c0_i32_0 = arith.constant 0 : i32
    %c0_i32_1 = arith.constant 0 : i32
    return %c0_i32, %c0_i32_0 : i32, i32
  }
  func.func @transform_3(%arg0: i32) -> (i32, i32) {
    %c0_i32 = arith.constant 0 : i32
    %c0_i32_0 = arith.constant 0 : i32
    %c0_i32_1 = arith.constant 0 : i32
    return %c0_i32, %c0_i32_0 : i32, i32
  }
  func.func @transform_4(%arg0: i32) -> (i32, i32) {
    %c0_i32 = arith.constant 0 : i32
    %c0_i32_0 = arith.constant 0 : i32
    %c0_i32_1 = arith.constant 0 : i32
    return %c0_i32, %c0_i32_0 : i32, i32
  }
}

</mosaic_0001>

<bundles_post_ra>
// kernel: tpu_custom_call.1
= control target key start
LH: loop header
LB: loop body
LE: loop exit
PB: predicated region body
PF: predicated region fallthrough
CT: control target
= control target key end

     0   :  { %9 = vsyncpa [#allocation3], 0  ;;  %s786_s0 = inlined_call_operand.hbm [shape: bf16[36,512], index: 0, kind: input, shape index: {}]   ;;  %s787_s1 = inlined_call_operand.vmem [shape: bf16[32,36], index: 1, kind: input, shape index: {}]   ;;  %s788_s2 = inlined_call_operand.vmem [shape: bf16[24,32], index: 2, kind: input, shape index: {}]   ;;  %s789_s3 = inlined_call_operand.vmem [shape: f32[56,1], index: 3, kind: input, shape index: {}]   ;;  %s790_s4 = inlined_call_operand.hbm [shape: f32[24,512], index: 4, kind: output, shape index: {}]  }
   0x1   :  { %10 = vsyncpa [#allocation4], 0  ;;  %s683_s15 = smov [#allocation2]   ;;  %s635_s19 = scalar_lea.hbm %s786_s0, 1280 }
   0x2   :  { %s16_s16 = sshll.u32 %s683_s15, 4  ;;  %p636_p0 = scmp.ne.s32.totalorder %s786_s0, %s635_s19  ;;  %s17_s16 = int_to_ptr.vmem [resolvable:$true] %s16_s16 }
   0x3   :  { %p639_p1 = scmp.lt.u32.totalorder %s635_s19, %s786_s0 }
   0x5   :  { %p641_p2 = pnand %p639_p1, %p636_p0 }
   0x7   :  { %644 = shalt.err (!%p641_p2)
}
   0x8   :  { %s645_s24 = scalar_lea.vmem %s17_s16, 1280  ;;  %p650_p4 = scmp.lt.s32.totalorder %s17_s16, %s17_s16 }
   0x9   :  { %p646_p3 = scmp.ne.s32.totalorder %s17_s16, %s645_s24  ;;  %p651_p5 = scmp.lt.s32.totalorder %s645_s24, %s645_s24 }
   0xb   :  { %p652_p6 = por %p651_p5, %p650_p4 }
   0xd   :  { %p653_p7 = pnand %p652_p6, %p646_p3 }
   0xf   :  { %656 = shalt.err (!%p653_p7)
}
  0x10   :  { %s684_s25 = smov 256   ;;  %s685_s26 = smov 16  }
  0x11   :  { %22 = dma.hbm_to_vmem [thread:$0]  %s786_s0, 1280, %s17_s16, [#allocation3], %s684_s25, %s684_s25, %s685_s26  }
  0x12   :  { %679 = dma.done.wait [#allocation3], 1280  }
  0x13   :  { %680 = vsyncadd [#allocation3], 4294966016  ;;  %v686_v0 = vmov 0   ;;  %v567_v1 = vld [vmem:[#allocation2 + $0x4] ss:$16 sps:$4 sm:$0xff]   ;;  %vm138_vm0 = vcmask 1041408  }
  0x14   :  { %183 = vmatprep.mubr.bf16.mxu0 %v686_v0  ;;  %236 = vmatprep.mubr.bf16.mxu1 %v686_v0  ;;  %v569_v2 = vld [vmem:[#allocation2 + $0xc] ss:$16 sps:$4 sm:$0xff]   ;;  %v571_v3 = vld [vmem:[#allocation2] ss:$16 sps:$4 sm:$0xff]   ;;  %v572_v4 = vld [vmem:[#allocation2 + $0x8] ss:$16 sps:$4 sm:$0xff]  }
  0x15   :  { %565 = vset.pattern.permute.xlu0 %v686_v0  ;;  %566 = vset.pattern.permute.xlu1 %v686_v0  ;;  %v573_v5 = vld [vmem:[#allocation2 + $0x24] ss:$16 sps:$4 sm:$0xff]   ;;  %v575_v6 = vld [vmem:[#allocation2 + $0x2c] ss:$16 sps:$4 sm:$0xff]   ;;  %v577_v7 = vld [vmem:[#allocation2 + $0x20] ss:$16 sps:$4 sm:$0xff]  }
  0x16   :  { %151 = vmatprep.subr.bf16.mxu0 %v567_v1  ;;  %204 = vmatprep.subr.bf16.mxu1 %v569_v2  ;;  %v578_v8 = vld [vmem:[#allocation2 + $0x28] ss:$16 sps:$4 sm:$0xff]   ;;  %v45_v9 = vld [vmem:[#allocation2 + $0x40] sm:$0x33]  ;;  %v49_v18 = vld [vmem:[%s789_s3 + $0x10] sm:$0xff]  ;;  %vm131_vm1 = vcmask 293888  }
  0x17   :  { %152 = vmatpush1.bf16.msra.mxu0 %v571_v3  ;;  %205 = vmatpush1.bf16.msra.mxu1 %v572_v4  ;;  %v46_v10 = vld [vmem:[#allocation2 + $0x48] sm:$0x33]  ;;  %v531_v11 = vcombine.high %v45_v9, %v45_v9  ;;  %v530_v13 = vcombine.low %v45_v9, %v45_v9  ;;  %v47_v15 = vld [vmem:[%s789_s3] sm:$0xff]  ;;  %v50_v21 = vld [vmem:[%s789_s3 + $0x18] sm:$0xff]  ;;  %vm310_vm2 = vcmask 261120  }
  0x18   :  { %153 = vmatprep.subr.bf16.mxu0 %v573_v5  ;;  %206 = vmatprep.subr.bf16.mxu1 %v575_v6  ;;  %v533_v12 = vcombine.high %v46_v10, %v46_v10  ;;  %v532_v14 = vcombine.low %v46_v10, %v46_v10  ;;  %v583_v19 = vld [vmem:[%s787_s1] sm:$0xff]   ;;  %v48_v20 = vld [vmem:[%s789_s3 + $0x8] sm:$0xff]  ;;  %v286_v25 = vld [vmem:[%s789_s3 + $0x30] sm:$0xff] }
  0x19   :  { %v140_v16 = vsel %vm138_vm0, %v530_v13, 0  ;;  %53 = vperm.xlu0 %565, %v47_v15   ;;  %63 = vperm.xlu1 %566, %v49_v18   ;;  %v284_v22 = vld [vmem:[%s789_s3 + $0x20] sm:$0xff]  ;;  %v285_v23 = vld [vmem:[%s789_s3 + $0x28] sm:$0xff] }
  0x1a   :  { %v146_v17 = vsel %vm138_vm0, %v532_v14, 0  ;;  %v584_v24 = vld [vmem:[%s787_s1 + $0x8] sm:$0xff]  }
  0x1b   :  { %154 = vmatpush1.bf16.msra.mxu0 %v577_v7  ;;  %207 = vmatpush1.bf16.msra.mxu1 %v578_v8 }
  0x1c   :  { %534 = vmatprep.subr.msk.bf16.mxu0 %vm138_vm0, %v531_v11  ;;  %537 = vmatprep.subr.msk.bf16.mxu1 %vm138_vm0, %v533_v12 }
  0x1d   :  { %58 = vperm.xlu0 %565, %v48_v20   ;;  %68 = vperm.xlu1 %566, %v50_v21  }
  0x1f   :  { %156 = vmatpush1.bf16.msra.mxu0 %v140_v16  ;;  %209 = vmatpush1.bf16.msra.mxu1 %v146_v17 }
  0x21   :  { %289 = vperm.xlu0 %565, %v284_v22   ;;  %294 = vperm.xlu1 %566, %v285_v23   ;;  %v585_v23 = vld [vmem:[%s788_s2] sm:$0xff]  }
  0x22   :  { %535 = vmatmul.mubr.msk.bf16.vlgmr.msra.gmra.mrb[0].mxu0 %vm131_vm1, %v583_v19  ;;  %538 = vmatmul.mubr.msk.bf16.vlgmr.msra.gmra.mrb[0].mxu1 %vm131_vm1, %v583_v19 }
  0x23   :  { %193 = vmatprep.mubr.bf16.mxu0 %v686_v0  ;;  %246 = vmatprep.mubr.bf16.mxu1 %v686_v0 }
  0x25   :  { %299 = vperm.xlu0 %565, %v286_v25  }
  0x2a   :  { %536 = vmatmul.mubr.msk.bf16.gmra.mrb[4].mxu0 %vm131_vm1, %v584_v24  ;;  %539 = vmatmul.mubr.msk.bf16.gmra.mrb[4].mxu1 %vm131_vm1, %v584_v24  ;;  %v586_v24 = vld [vmem:[%s788_s2 + $0x8] ss:$0 sps:$4 sm:$0xff]   ;;  %s687_s2 = smov [#allocation5]  }
  0x2b   :  { %349 = vmatprep.mubr.bf16.mxu0 %v686_v0  ;;  %400 = vmatprep.mubr.bf16.mxu1 %v686_v0  ;;  %s508_s22 = sshll.u32 %s687_s2, 4  ;;  %s509_s22 = int_to_ptr.vmem [resolvable:$true] %s508_s22 }
  0x2c   :  { %s657_s23 = scalar_lea.vmem %s509_s22, 1536  ;;  %p662_p9 = scmp.lt.s32.totalorder %s509_s22, %s509_s22 }
  0x2d   :  { %p658_p8 = scmp.ne.s32.totalorder %s509_s22, %s657_s23  ;;  %p663_p10 = scmp.lt.s32.totalorder %s657_s23, %s657_s23 }
  0x2f   :  { %p664_p11 = por %p663_p10, %p662_p9 }
  0x31   :  { %p665_p12 = pnand %p664_p11, %p658_p8 }
  0x98   :  { %v54_v26 = vpop.permute.xlu0 %53  ;;  %v64_v28 = vpop.permute.xlu1 %63 }
  0x9c   :  { %v59_v27 = vpop.permute.xlu0 %58  ;;  %v69_v55 = vpop.permute.xlu1 %68 }
  0xa0   :  { %v290_v25 = vpop.permute.xlu0 %289 }
  0xf5   :  { %v185_v29 = vpop.f32.mrb[0].mxu0  ;;  %v238_v30 = vpop.f32.mrb[0].mxu1 }
  0xf6   :  { %v186_v31 = vadd.f32 %v185_v29, %v54_v26  ;;  %v239_v32 = vadd.f32 %v238_v30, %v54_v26  ;;  %v187_v33 = vpop.f32.mrb[1].mxu0  ;;  %v240_v34 = vpop.f32.mrb[1].mxu1 }
  0xf7   :  { %v188_v35 = vadd.f32 %v187_v33, %v54_v26  ;;  %v241_v36 = vadd.f32 %v240_v34, %v54_v26  ;;  %v189_v37 = vpop.f32.mrb[2].mxu0  ;;  %v242_v38 = vpop.f32.mrb[2].mxu1 }
  0xf8   :  { %v190_v39 = vadd.f32 %v189_v37, %v59_v27  ;;  %v243_v40 = vadd.f32 %v242_v38, %v59_v27  ;;  %v191_v41 = vpop.f32.mrb[3].mxu0  ;;  %v244_v42 = vpop.f32.mrb[3].mxu1  ;;  %v257_v45 = vmax.f32 %v186_v31, 0.0  ;;  %v259_v46 = vmax.f32 %v239_v32, 0.0 }
  0xf9   :  { %v192_v43 = vadd.f32 %v191_v41, %v59_v27  ;;  %v245_v44 = vadd.f32 %v244_v42, %v59_v27  ;;  %v258_v49 = vmax.f32 %v188_v35, 0.0  ;;  %v260_v50 = vmax.f32 %v241_v36, 0.0  ;;  %v295_v26 = vpop.permute.xlu1 %294 }
  0xfa   :  { %v261_v47 = vmax.f32 %v190_v39, 0.0  ;;  %v263_v48 = vmax.f32 %v243_v40, 0.0 }
  0xfb   :  { %v262_v51 = vmax.f32 %v192_v43, 0.0  ;;  %v264_v52 = vmax.f32 %v245_v44, 0.0 }
  0xfc   :  { %v276_v53 = vpack.c.bf16 %v261_v47, %v257_v45  ;;  %v278_v54 = vpack.c.bf16 %v263_v48, %v259_v46  ;;  %v300_v48 = vpop.permute.xlu0 %299 }
  0xfd   :  { %v277_v56 = vpack.c.bf16 %v262_v51, %v258_v49  ;;  %v279_v57 = vpack.c.bf16 %v264_v52, %v260_v50  ;;  %v195_v58 = vpop.f32.mrb[4].mxu0  ;;  %v248_v59 = vpop.f32.mrb[4].mxu1 }
  0xfe   :  { %v196_v60 = vadd.f32 %v195_v58, %v64_v28  ;;  %v249_v61 = vadd.f32 %v248_v59, %v64_v28  ;;  %v197_v62 = vpop.f32.mrb[5].mxu0  ;;  %v250_v63 = vpop.f32.mrb[5].mxu1 }
  0xff   :  { %v198_v1 = vadd.f32 %v197_v62, %v64_v28  ;;  %v251_v2 = vadd.f32 %v250_v63, %v64_v28  ;;  %v199_v3 = vpop.f32.mrb[6].mxu0  ;;  %v252_v4 = vpop.f32.mrb[6].mxu1  ;;  %317 = vmatprep.subr.bf16.mxu0 %v277_v56  ;;  %368 = vmatprep.subr.bf16.mxu1 %v279_v57 }
 0x100   :  { %v200_v5 = vadd.f32 %v199_v3, %v69_v55  ;;  %v253_v6 = vadd.f32 %v252_v4, %v69_v55  ;;  %v201_v7 = vpop.f32.mrb[7].mxu0  ;;  %v254_v8 = vpop.f32.mrb[7].mxu1  ;;  %318 = vmatpush1.bf16.msra.mxu0 %v276_v53  ;;  %369 = vmatpush1.bf16.msra.mxu1 %v278_v54  ;;  %v265_v11 = vmax.f32 %v196_v60, 0.0  ;;  %v267_v12 = vmax.f32 %v249_v61, 0.0 }
 0x101   :  { %v202_v9 = vadd.f32 %v201_v7, %v69_v55  ;;  %v255_v10 = vadd.f32 %v254_v8, %v69_v55  ;;  %v266_v15 = vmax.f32 %v198_v1, 0.0  ;;  %v268_v16 = vmax.f32 %v251_v2, 0.0 }
 0x102   :  { %v269_v13 = vmax.f32 %v200_v5, 0.0  ;;  %v271_v14 = vmax.f32 %v253_v6, 0.0 }
 0x103   :  { %v270_v17 = vmax.f32 %v202_v9, 0.0  ;;  %v272_v18 = vmax.f32 %v255_v10, 0.0 }
 0x104   :  { %v280_v19 = vpack.c.bf16 %v269_v13, %v265_v11  ;;  %v282_v20 = vpack.c.bf16 %v271_v14, %v267_v12 }
 0x105   :  { %v281_v21 = vpack.c.bf16 %v270_v17, %v266_v15  ;;  %v283_v22 = vpack.c.bf16 %v272_v18, %v268_v16 }
 0x107   :  { %319 = vmatprep.subr.bf16.mxu0 %v281_v21  ;;  %370 = vmatprep.subr.bf16.mxu1 %v283_v22 }
 0x108   :  { %320 = vmatpush1.bf16.msra.mxu0 %v280_v19  ;;  %371 = vmatpush1.bf16.msra.mxu1 %v282_v20 }
 0x10b   :  { %542 = vmatmul.mubr.msk.bf16.vlgmr.msra.gmra.mrb[8].mxu0 %vm310_vm2, %v585_v23  ;;  %544 = vmatmul.mubr.msk.bf16.vlgmr.msra.gmra.mrb[8].mxu1 %vm310_vm2, %v585_v23 }
 0x10c   :  { %359 = vmatprep.mubr.bf16.mxu0 %v686_v0  ;;  %410 = vmatprep.mubr.bf16.mxu1 %v686_v0 }
 0x113   :  { %543 = vmatmul.mubr.msk.bf16.gmra.mrb[12].mxu0 %vm310_vm2, %v586_v24  ;;  %545 = vmatmul.mubr.msk.bf16.gmra.mrb[12].mxu1 %vm310_vm2, %v586_v24 }
 0x1de   :  { %v351_v27 = vpop.f32.mrb[8].mxu0  ;;  %v402_v28 = vpop.f32.mrb[8].mxu1 }
 0x1df   :  { %v352_v29 = vadd.f32 %v351_v27, %v290_v25  ;;  %v403_v30 = vadd.f32 %v402_v28, %v290_v25  ;;  %v353_v31 = vpop.f32.mrb[9].mxu0  ;;  %v404_v32 = vpop.f32.mrb[9].mxu1 }
 0x1e0   :  { %v354_v33 = vadd.f32 %v353_v31, %v290_v25  ;;  %v405_v34 = vadd.f32 %v404_v32, %v290_v25  ;;  %v355_v35 = vpop.f32.mrb[10].mxu0  ;;  %v406_v36 = vpop.f32.mrb[10].mxu1 }
 0x1e1   :  { %v546_v37 = vmul.f32 -1.442695, %v352_v29  ;;  %v548_v0 = vmul.f32 -1.442695, %v403_v30  ;;  %v356_v38 = vadd.f32 %v355_v35, %v295_v26  ;;  %v407_v39 = vadd.f32 %v406_v36, %v295_v26  ;;  %v357_v40 = vpop.f32.mrb[11].mxu0  ;;  %v408_v41 = vpop.f32.mrb[11].mxu1 }
 0x1e2   :  { %v547_v42 = vmul.f32 -1.442695, %v354_v33  ;;  %v549_v43 = vmul.f32 -1.442695, %v405_v34  ;;  %v358_v44 = vadd.f32 %v357_v40, %v295_v26  ;;  %v409_v45 = vadd.f32 %v408_v41, %v295_v26 }
 0x1e3   :  { %587 = vpow2.f32 %v546_v37  ;;  %v550_v46 = vmul.f32 -1.442695, %v356_v38  ;;  %v552_v47 = vmul.f32 -1.442695, %v407_v39 }
 0x1e4   :  { %589 = vpow2.f32 %v548_v0  ;;  %v551_v49 = vmul.f32 -1.442695, %v358_v44  ;;  %v553_v50 = vmul.f32 -1.442695, %v409_v45 }
 0x1e5   :  { %591 = vpow2.f32 %v547_v42 }
 0x1e6   :  { %593 = vpow2.f32 %v549_v43  ;;  %v361_v51 = vpop.f32.mrb[12].mxu0  ;;  %v412_v52 = vpop.f32.mrb[12].mxu1 }
 0x1e7   :  { %595 = vpow2.f32 %v550_v46  ;;  %v362_v53 = vadd.f32 %v361_v51, %v300_v48  ;;  %v413_v54 = vadd.f32 %v412_v52, %v300_v48  ;;  %v363_v55 = vpop.f32.mrb[13].mxu0  ;;  %v414_v56 = vpop.f32.mrb[13].mxu1 }
 0x1e8   :  { %597 = vpow2.f32 %v552_v47  ;;  %v364_v57 = vadd.f32 %v363_v55, %v300_v48  ;;  %v415_v58 = vadd.f32 %v414_v56, %v300_v48  ;;  %v365_v59 = vpop.f32.mrb[14].mxu0  ;;  %v416_v60 = vpop.f32.mrb[14].mxu1 }
 0x1e9   :  { %599 = vpow2.f32 %v551_v49  ;;  %v554_v61 = vmul.f32 -1.442695, %v362_v53  ;;  %v556_v62 = vmul.f32 -1.442695, %v413_v54  ;;  %v366_v63 = vpop.f32.mrb[15].mxu0  ;;  %v417_v1 = vpop.f32.mrb[15].mxu1 }
 0x1ea   :  { %601 = vpow2.f32 %v553_v50  ;;  %v555_v2 = vmul.f32 -1.442695, %v364_v57  ;;  %v557_v3 = vmul.f32 -1.442695, %v415_v58 }
 0x1eb   :  { %603 = vpow2.f32 %v554_v61 }
 0x1ec   :  { %605 = vpow2.f32 %v556_v62 }
 0x1ed   :  { %v588_v4 = vpop.eup %587  ;;  %607 = vpow2.f32 %v555_v2 }
 0x1ee   :  { %v590_v5 = vpop.eup %589  ;;  %v455_v6 = vadd.f32 1.0, %v588_v4  ;;  %609 = vpow2.f32 %v557_v3 }
 0x1ef   :  { %v592_v7 = vpop.eup %591  ;;  %v457_v8 = vadd.f32 1.0, %v590_v5 }
 0x1f0   :  { %v594_v9 = vpop.eup %593  ;;  %611 = vrcp.f32 %v455_v6  ;;  %v456_v10 = vadd.f32 1.0, %v592_v7 }
 0x1f1   :  { %v596_v11 = vpop.eup %595  ;;  %613 = vrcp.f32 %v457_v8  ;;  %v458_v12 = vadd.f32 1.0, %v594_v9 }
 0x1f2   :  { %v598_v13 = vpop.eup %597  ;;  %615 = vrcp.f32 %v456_v10  ;;  %v459_v14 = vadd.f32 1.0, %v596_v11 }
 0x1f3   :  { %v600_v15 = vpop.eup %599  ;;  %617 = vrcp.f32 %v458_v12  ;;  %v461_v16 = vadd.f32 1.0, %v598_v13 }
 0x1f4   :  { %v602_v17 = vpop.eup %601  ;;  %619 = vrcp.f32 %v459_v14  ;;  %v460_v18 = vadd.f32 1.0, %v600_v15 }
 0x1f5   :  { %v604_v19 = vpop.eup %603  ;;  %621 = vrcp.f32 %v461_v16  ;;  %v462_v20 = vadd.f32 1.0, %v602_v17 }
 0x1f6   :  { %v606_v21 = vpop.eup %605  ;;  %623 = vrcp.f32 %v460_v18  ;;  %v463_v22 = vadd.f32 1.0, %v604_v19 }
 0x1f7   :  { %v608_v23 = vpop.eup %607  ;;  %625 = vrcp.f32 %v462_v20  ;;  %v465_v24 = vadd.f32 1.0, %v606_v21 }
 0x1f8   :  { %v610_v25 = vpop.eup %609  ;;  %627 = vrcp.f32 %v463_v22  ;;  %v464_v26 = vadd.f32 1.0, %v608_v23 }
 0x1f9   :  { %629 = vrcp.f32 %v465_v24  ;;  %v466_v27 = vadd.f32 1.0, %v610_v25 }
 0x1fa   :  { %v612_v28 = vpop.eup %611  ;;  %631 = vrcp.f32 %v464_v26 }
 0x1fb   :  { %v614_v29 = vpop.eup %613  ;;  %491 = vst [vmem:[#allocation5] sm:$0xff] %v612_v28  ;;  %633 = vrcp.f32 %v466_v27 }
 0x1fc   :  { %v616_v30 = vpop.eup %615  ;;  %493 = vst [vmem:[#allocation5 + $0x10] sm:$0xff] %v614_v29 }
 0x1fd   :  { %v618_v31 = vpop.eup %617  ;;  %492 = vst [vmem:[#allocation5 + $0x8] sm:$0xff] %v616_v30 }
 0x1fe   :  { %v620_v32 = vpop.eup %619  ;;  %494 = vst [vmem:[#allocation5 + $0x18] sm:$0xff] %v618_v31 }
 0x1ff   :  { %v622_v33 = vpop.eup %621  ;;  %495 = vst [vmem:[#allocation5 + $0x20] sm:$0xff] %v620_v32 }
 0x200   :  { %v624_v34 = vpop.eup %623  ;;  %497 = vst [vmem:[#allocation5 + $0x30] sm:$0xff] %v622_v33 }
 0x201   :  { %v626_v35 = vpop.eup %625  ;;  %496 = vst [vmem:[#allocation5 + $0x28] sm:$0xff] %v624_v34 }
 0x202   :  { %v628_v36 = vpop.eup %627  ;;  %498 = vst [vmem:[#allocation5 + $0x38] sm:$0xff] %v626_v35 }
 0x203   :  { %v630_v37 = vpop.eup %629  ;;  %499 = vst [vmem:[#allocation5 + $0x40] sm:$0xff] %v628_v36 }
 0x204   :  { %v632_v0 = vpop.eup %631  ;;  %501 = vst [vmem:[#allocation5 + $0x50] sm:$0xff] %v630_v37 }
 0x205   :  { %v634_v38 = vpop.eup %633  ;;  %500 = vst [vmem:[#allocation5 + $0x48] sm:$0xff] %v632_v0 }
 0x206   :  { %502 = vst [vmem:[#allocation5 + $0x58] sm:$0xff] %v634_v38 }
 0x207   :  { %668 = shalt.err (!%p665_p12)
}
 0x208   :  { %s669_s26 = scalar_lea.hbm %s790_s4, 1536 }
 0x209   :  { %p670_p13 = scmp.ne.s32.totalorder %s790_s4, %s669_s26  ;;  %p673_p0 = scmp.lt.u32.totalorder %s669_s26, %s790_s4 }
 0x20b   :  { %p675_p1 = pnand %p673_p0, %p670_p13 }
 0x20d   :  { %678 = shalt.err (!%p675_p1)
}
 0x20e   :  { %s688_s30 = smov 512   ;;  %s689_s5 = smov 32  }
 0x20f   :  { %514 = dma.vmem_to_hbm [thread:$0]  %s509_s22, 1536, %s790_s4, [#allocation4], %s688_s30, %s688_s30, %s689_s5  }
 0x210   :  { %681 = dma.done.wait [#allocation4], 1536  }
 0x211   :  { %682 = vsyncadd [#allocation4], 4294965760 }
 0x212   :  { %518 = vsyncpa [#allocation3], 1 }
 0x213   :  { %519 = vsyncpa [#allocation4], 1 }

</bundles_post_ra>
